<compile_context>
chip_gen: v5e
topology: v5e:2x2
jax: 0.10.0
libtpu: 0.0.40
codegen_flags: <defaults>
</compile_context>

<pallas_src>
import jax
import jax.numpy as jnp
from jax.experimental import pallas as pl
from jax.experimental.pallas import tpu as pltpu


def _gamerecs_kernel(u_ref, g_ref, bias_ref, out_ref):
    # u_ref / g_ref: (D, TB) tiles — features on sublanes, batch on lanes.
    # Upcast to f32 before the multiply (v5e's VPU has no native bf16 math).
    u = u_ref[...].astype(jnp.float32)
    g = g_ref[...].astype(jnp.float32)
    dot = jnp.sum(u * g, axis=0, keepdims=True)      # (1, TB) cross-sublane reduce (XLU)
    out_ref[...] = dot + bias_ref[...]               # lane-dense (1, TB) store


def game_recs_bias_forward(samples, user_emb, game_emb, user_bias, game_bias, *,
                           tile_b=4096, stream_dtype=jnp.float32):
    """Pallas forward matching GameRecsBias.forward(samples). Returns (B,) f32 scores."""
    assert tile_b % 128 == 0, "tile_b must be lane-aligned (multiple of 128)"
    B = samples.shape[0]
    n_users, D = user_emb.shape
    n_games = game_emb.shape[0]

    # Guard against out-of-range ids (production safety; no-op for valid inputs).
    uid = jnp.clip(samples[:, 0].astype(jnp.int32), 0, n_users - 1)
    gid = jnp.clip(samples[:, 1].astype(jnp.int32), 0, n_games - 1)

    # Effective lane tile: large for production batches, shrunk (still 128-aligned) for
    # small ones.
    tb = min(tile_b, max(128, ((B + 127) // 128) * 128))
    num_tiles = pl.cdiv(B, tb)
    b_pad = num_tiles * tb

    # Pad the *ids* (cheap), not the gathered arrays. Padded lanes read row 0 of the
    # tables and are sliced off at the end (nothing downstream sees them).
    pad = b_pad - B
    if pad:
        uid = jnp.pad(uid, (0, pad))
        gid = jnp.pad(gid, (0, pad))

    # Pre-transposed (tiny) tables so one gather yields the (D, b_pad) kernel layout
    # directly — no pad/transpose passes over the large gathered data.
    u_tab_t = user_emb.T.astype(stream_dtype)    # (D, n_users)
    g_tab_t = game_emb.T.astype(stream_dtype)    # (D, n_games)
    Ut = jnp.take(u_tab_t, uid, axis=1)          # (D, b_pad)
    Gt = jnp.take(g_tab_t, gid, axis=1)          # (D, b_pad)

    # Bias term stays f32 regardless of the streaming dtype (negligible traffic).
    bias_sum = (jnp.take(user_bias[:, 0], uid)
                + jnp.take(game_bias[:, 0], gid)).astype(jnp.float32)[None, :]   # (1, b_pad)

    grid_spec = pltpu.PrefetchScalarGridSpec(
        num_scalar_prefetch=0,
        grid=(num_tiles,),
        in_specs=[
            # sublane dim = D equals the full array extent; lane dim tb is 128-aligned.
            pl.BlockSpec((D, tb), lambda i: (0, i)),
            pl.BlockSpec((D, tb), lambda i: (0, i)),
            pl.BlockSpec((1, tb), lambda i: (0, i)),
        ],
        out_specs=pl.BlockSpec((1, tb), lambda i: (0, i)),
    )

    elt = jnp.dtype(stream_dtype).itemsize
    cost = pl.CostEstimate(
        flops=2 * b_pad * D,
        transcendentals=0,
        bytes_accessed=2 * b_pad * D * elt + 2 * b_pad * 4,   # inputs + bias + output
    )

    out = pl.pallas_call(
        _gamerecs_kernel,
        grid_spec=grid_spec,
        out_shape=jax.ShapeDtypeStruct((1, b_pad), jnp.float32),
        compiler_params=pltpu.CompilerParams(
            dimension_semantics=("parallel",),   # independent batch tiles (v7x: 2 TCs)
        ),
        cost_estimate=cost,
    )(Ut, Gt, bias_sum)

    return out[0, :B]   # (B,) — matches torch .squeeze() on the score vector


def _xavier_uniform(key, shape):
    # torch nn.init.xavier_uniform_ on a 2-D tensor
    fan_out, fan_in = shape
    bound = (6.0 / (fan_in + fan_out)) ** 0.5
    return jax.random.uniform(key, shape, jnp.float32, -bound, bound)


if __name__ == "__main__":
    n_users, n_games, emb_dim = 16, 12, 32
    batch = 8

    root = jax.random.PRNGKey(0)
    k_u, k_g, k_su, k_sg = jax.random.split(root, 4)

    # Deterministic parameter init (mirrors the module's __init__)
    user_emb = _xavier_uniform(k_u, (n_users, emb_dim))
    game_emb = _xavier_uniform(k_g, (n_games, emb_dim))
    user_bias = jnp.zeros((n_users, 1), jnp.float32)
    game_bias = jnp.zeros((n_games, 1), jnp.float32)
    # Make biases nonzero so the bias path is actually exercised
    user_bias = user_bias + 0.01 * jnp.arange(n_users, dtype=jnp.float32)[:, None]
    game_bias = game_bias - 0.02 * jnp.arange(n_games, dtype=jnp.float32)[:, None]

    samples = jnp.stack(
        [
            jax.random.randint(k_su, (batch,), 0, n_users, dtype=jnp.int32),
            jax.random.randint(k_sg, (batch,), 0, n_games, dtype=jnp.int32),
        ],
        axis=1,
    )  # (B, 2)

    # Pure-JAX reference of the PyTorch forward
    u = user_emb[samples[:, 0]]
    g = game_emb[samples[:, 1]]
    ref = (u * g).sum(1) + user_bias[samples[:, 0], 0] + game_bias[samples[:, 1], 0]

    # Default f32 streaming — exact-precision path.
    out = jax.block_until_ready(
        game_recs_bias_forward(samples, user_emb, game_emb, user_bias, game_bias))
    assert out.shape == (batch,)
    assert jnp.allclose(out, ref, atol=1e-5, rtol=1e-5), (out, ref)

    # bf16-streaming variant (half the HBM bytes on this bandwidth-bound kernel);
    # bias term stays f32, so only the embedding dot loses a little precision.
    out_bf16 = jax.block_until_ready(
        game_recs_bias_forward(samples, user_emb, game_emb, user_bias, game_bias,
                               stream_dtype=jnp.bfloat16))
    assert out_bf16.shape == (batch,)
    assert jnp.allclose(out_bf16, ref, atol=3e-2, rtol=3e-2), (out_bf16, ref)

    print("KERNEL_OK")
</pallas_src>

<mosaic_0001>
module attributes {stable_mosaic.version = 11 : i64} {
  func.func @_gamerecs_kernel(%arg0: i32, %arg1: memref<32x128xf32, #tpu.memory_space<vmem>>, %arg2: memref<32x128xf32, #tpu.memory_space<vmem>>, %arg3: memref<1x128xf32, #tpu.memory_space<vmem>>, %arg4: memref<1x128xf32, #tpu.memory_space<vmem>>) attributes {dimension_semantics = [#tpu.dimension_semantics<parallel>], iteration_bounds = array<i64: 1>, scalar_prefetch = 0 : i64, scratch_operands = 0 : i64, tpu.core_type = #tpu.core_type<tc>, window_params = [{transform_indices = @transform_0, window_bounds = array<i64: 32, 128>}, {transform_indices = @transform_1, window_bounds = array<i64: 32, 128>}, {transform_indices = @transform_2, window_bounds = array<i64: 1, 128>}, {transform_indices = @transform_3, window_bounds = array<i64: 1, 128>}]} {
    %c0 = arith.constant 0 : index
    %c0_0 = arith.constant 0 : index
    %0 = vector.load %arg1[%c0, %c0_0] : memref<32x128xf32, #tpu.memory_space<vmem>>, vector<32x128xf32>
    %c0_1 = arith.constant 0 : index
    %c0_2 = arith.constant 0 : index
    %1 = vector.load %arg2[%c0_1, %c0_2] : memref<32x128xf32, #tpu.memory_space<vmem>>, vector<32x128xf32>
    %2 = arith.mulf %0, %1 : vector<32x128xf32>
    %cst = arith.constant dense<0.000000e+00> : vector<128xf32>
    %3 = vector.multi_reduction <add>, %2, %cst [0] : vector<32x128xf32> to vector<128xf32>
    %4 = vector.shape_cast %3 : vector<128xf32> to vector<1x128xf32>
    %c0_3 = arith.constant 0 : index
    %c0_4 = arith.constant 0 : index
    %5 = vector.load %arg3[%c0_3, %c0_4] : memref<1x128xf32, #tpu.memory_space<vmem>>, vector<1x128xf32>
    %6 = arith.addf %4, %5 : vector<1x128xf32>
    %c0_5 = arith.constant 0 : index
    %c0_6 = arith.constant 0 : index
    %7 = vector.load %arg4[%c0_5, %c0_6] : memref<1x128xf32, #tpu.memory_space<vmem>>, vector<1x128xf32>
    tpu.vector_store %arg4[%c0_5, %c0_6], %6 {strides = array<i32>} : memref<1x128xf32, #tpu.memory_space<vmem>>, vector<1x128xf32>,
    return
  }
  func.func @transform_0(%arg0: i32) -> (i32, i32) {
    %c0_i32 = arith.constant 0 : i32
    %c0_i32_0 = arith.constant 0 : i32
    return %c0_i32, %arg0 : i32, i32
  }
  func.func @transform_1(%arg0: i32) -> (i32, i32) {
    %c0_i32 = arith.constant 0 : i32
    %c0_i32_0 = arith.constant 0 : i32
    return %c0_i32, %arg0 : i32, i32
  }
  func.func @transform_2(%arg0: i32) -> (i32, i32) {
    %c0_i32 = arith.constant 0 : i32
    %c0_i32_0 = arith.constant 0 : i32
    return %c0_i32, %arg0 : i32, i32
  }
  func.func @transform_3(%arg0: i32) -> (i32, i32) {
    %c0_i32 = arith.constant 0 : i32
    %c0_i32_0 = arith.constant 0 : i32
    return %c0_i32, %arg0 : i32, i32
  }
}

</mosaic_0001>

<bundles_post_ra>
// kernel: tpu_custom_call.1
= control target key start
LH: loop header
LB: loop body
LE: loop exit
PB: predicated region body
PF: predicated region fallthrough
CT: control target
= control target key end

     0   :  { %8 = vsyncpa [#allocation3], 0  ;;  %s209_s0 = inlined_call_operand.hbm [shape: f32[32,128], index: 0, kind: input, shape index: {}]   ;;  %s210_s1 = inlined_call_operand.hbm [shape: f32[32,128], index: 1, kind: input, shape index: {}]   ;;  %s211_s2 = inlined_call_operand.vmem [shape: f32[1,128], index: 2, kind: input, shape index: {}]   ;;  %s212_s3 = inlined_call_operand.hbm [shape: f32[1,128], index: 3, kind: output, shape index: {}]  }
   0x1   :  { %9 = vsyncpa [#allocation6], 0 }
   0x2   :  { %10 = vsyncpa [#allocation4], 0  ;;  %s15_s14 = sshll.u32 %s209_s0, 4  ;;  %s172_s15 = smov [#allocation2]   ;;  %s16_s14 = int_to_ptr.hbm [resolvable:$true] %s15_s14 }
   0x3   :  { %s17_s16 = sshll.u32 %s172_s15, 4  ;;  %s28_s19 = sshll.u32 %s210_s1, 4  ;;  %s18_s16 = int_to_ptr.vmem [resolvable:$true] %s17_s16  ;;  %s29_s19 = int_to_ptr.hbm [resolvable:$true] %s28_s19 }
   0x4   :  { %s173_s20 = smov 128   ;;  %s174_s21 = smov 8  }
   0x5   :  { %23 = dma.hbm_to_vmem [thread:$0]  %s16_s14, 512, %s18_s16, [#allocation3], %s173_s20, %s173_s20, %s174_s21  }
   0x6   :  { %s175_s22 = smov [#allocation5]  }
   0x7   :  { %s30_s23 = sshll.u32 %s175_s22, 4  ;;  %s31_s23 = int_to_ptr.vmem [resolvable:$true] %s30_s23 }
   0x8   :  { %36 = dma.hbm_to_vmem [thread:$0]  %s29_s19, 512, %s31_s23, [#allocation6], %s173_s20, %s173_s20, %s174_s21  }
   0x9   :  { %166 = dma.done.wait [#allocation3], 512  }
   0xa   :  { %167 = vsyncadd [#allocation3], 4294966784 }
   0xb   :  { %168 = dma.done.wait [#allocation6], 512  }
   0xc   :  { %169 = vsyncadd [#allocation6], 4294966784  ;;  %v47_v0 = vld [vmem:[#allocation2] sm:$0xff]  ;;  %v48_v1 = vld [vmem:[#allocation2 + $0x8] sm:$0xff]  ;;  %s176_s24 = smov [#allocation7]   ;;  %s78_s28 = sshll.u32 %s212_s3, 4  ;;  %s79_s28 = int_to_ptr.hbm [resolvable:$true] %s78_s28 }
   0xd   :  { %v49_v2 = vld [vmem:[#allocation2 + $0x10] sm:$0xff]  ;;  %v50_v3 = vld [vmem:[#allocation2 + $0x18] sm:$0xff]  ;;  %v51_v4 = vld [vmem:[#allocation5] sm:$0xff]  ;;  %s76_s25 = sshll.u32 %s176_s24, 4  ;;  %s77_s25 = int_to_ptr.vmem [resolvable:$true] %s76_s25 }
   0xe   :  { %v52_v5 = vld [vmem:[#allocation5 + $0x8] sm:$0xff]  ;;  %v53_v6 = vld [vmem:[#allocation5 + $0x10] sm:$0xff]  ;;  %v54_v7 = vld [vmem:[#allocation5 + $0x18] sm:$0xff]  ;;  %v55_v8 = vmul.f32 %v51_v4, %v47_v0 }
   0xf   :  { %v56_v9 = vmul.f32 %v52_v5, %v48_v1  ;;  %v57_v10 = vmul.f32 %v53_v6, %v49_v2  ;;  %v58_v11 = vmul.f32 %v54_v7, %v50_v3  ;;  %v68_v20 = vld [vmem:[%s211_s2] sm:$0x1] }
  0x11   :  { %v59_v12 = vadd.f32 %v56_v9, %v55_v8 }
  0x13   :  { %v60_v13 = vadd.f32 %v59_v12, %v57_v10 }
  0x15   :  { %v61_v14 = vadd.f32 %v60_v13, %v58_v11 }
  0x17   :  { %v62_v15 = vrot.slane %v61_v14, 4 }
  0x19   :  { %v63_v16 = vadd.f32 %v62_v15, %v61_v14 }
  0x1b   :  { %v64_v17 = vrot.slane %v63_v16, 2 }
  0x1d   :  { %v65_v18 = vadd.f32 %v64_v17, %v63_v16 }
  0x1f   :  { %v66_v19 = vrot.slane %v65_v18, 1 }
  0x21   :  { %v67_v21 = vadd.f32 %v66_v19, %v65_v18 }
  0x23   :  { %v69_v22 = vadd.f32 %v68_v20, %v67_v21 }
  0x25   :  { %70 = vst [vmem:[#allocation7] sm:$0x1] %v69_v22 }
  0x26   :  { %81 = dma.vmem_to_hbm [thread:$0]  %s77_s25, 16, %s79_s28, [#allocation4]  }
  0x27   :  { %170 = dma.done.wait [#allocation4], 16  }
  0x28   :  { %171 = vsyncadd [#allocation4], 4294967280 }
  0x29   :  { %86 = vsyncpa [#allocation3], 1 }
  0x2a   :  { %87 = vsyncpa [#allocation6], 1 }
  0x2b   :  { %88 = vsyncpa [#allocation4], 1 }

</bundles_post_ra>
